<compile_context>
chip_gen: v6e
topology: v6e:2x2x1
jax: 0.10.0
libtpu: 0.0.40
codegen_flags: <defaults>
</compile_context>

<pallas_src>
import jax
import jax.numpy as jnp
from jax.experimental import pallas as pl
from jax.experimental.pallas import tpu as pltpu

LANE = 128      # vreg lane width
SUBLANE = 8     # fp32 sublane granularity


def _round_up(x, m):
    return -(-x // m) * m


def _maybe_pad2(a, rows, cols):
    r, c = a.shape
    if (r, c) == (rows, cols):
        return a
    return jnp.pad(a, ((0, rows - r), (0, cols - c)))


# ----------------------------------------------------------------------------
# Kernel bodies
# ----------------------------------------------------------------------------
def _encode(a, x, w1, w2):
    """2-layer GCN on VMEM-resident values: A @ ReLU(A @ X @ W1) @ W2.

    Operands are bf16; every jnp.dot accumulates in f32 on the MXU and the
    f32 intermediate is cast back to bf16 before feeding the next matmul.
    """
    xw1 = jnp.dot(x, w1, preferred_element_type=jnp.float32)
    h1 = jnp.maximum(
        jnp.dot(a, xw1.astype(a.dtype), preferred_element_type=jnp.float32), 0.0)
    h1w2 = jnp.dot(h1.astype(w2.dtype), w2, preferred_element_type=jnp.float32)
    return jnp.dot(a, h1w2.astype(a.dtype), preferred_element_type=jnp.float32)


def _dual_graph_kernel(ga_ref, gx_ref, gw1_ref, gw2_ref,
                       ka_ref, kx_ref, kw1_ref, kw2_ref,
                       wp_ref, bp_ref,
                       gh_ref, kh_ref, gz_ref, kz_ref):
    """grid=() path (v5e/v6e): both encoders + projection in one body."""
    g_h = _encode(ga_ref[...], gx_ref[...], gw1_ref[...], gw2_ref[...])
    k_h = _encode(ka_ref[...], kx_ref[...], kw1_ref[...], kw2_ref[...])
    gh_ref[...] = g_h.astype(gh_ref.dtype)
    kh_ref[...] = k_h.astype(kh_ref.dtype)
    gz_ref[...] = (jnp.dot(g_h.astype(wp_ref.dtype), wp_ref[...],
                           preferred_element_type=jnp.float32)
                   + bp_ref[...]).astype(gz_ref.dtype)
    kz_ref[...] = (jnp.dot(k_h.astype(wp_ref.dtype), wp_ref[...],
                           preferred_element_type=jnp.float32)
                   + bp_ref[...]).astype(kz_ref.dtype)


def _stacked_graph_kernel(a_ref, x_ref, w1_ref, w2_ref, wp_ref, bp_ref,
                          h_ref, z_ref):
    """grid=(2,) path: one grid step = one graph (shards across TCs on v7x)."""
    h = _encode(a_ref[0], x_ref[0], w1_ref[0], w2_ref[0])
    h_ref[0] = h.astype(h_ref.dtype)
    z_ref[0] = (jnp.dot(h.astype(wp_ref.dtype), wp_ref[...],
                        preferred_element_type=jnp.float32)
                + bp_ref[...]).astype(z_ref.dtype)


def _linear_kernel(h_ref, w_ref, b_ref, o_ref):
    """Standalone projection head: z = H @ W + b (lane-dense output)."""
    o_ref[...] = (jnp.dot(h_ref[...], w_ref[...],
                          preferred_element_type=jnp.float32)
                  + b_ref[...]).astype(o_ref.dtype)


# ----------------------------------------------------------------------------
# One-time parameter preparation (hoisted out of the forward hot path)
# ----------------------------------------------------------------------------
def _detect_multicore():
    try:
        kind = jax.devices()[0].device_kind.lower()
    except Exception:
        return False
    # v7x exposes 2 TensorCores per chip; v4 megacore can shard "parallel" axes.
    return ("v7" in kind) or ("v4" in kind)


def prepare_gnn_params(g_params, kg_params, proj_params, *,
                       param_dtype=jnp.bfloat16, multicore=None):
    """Cast / pad / stack all weights ONCE; only A/X handling stays per call."""
    if multicore is None:
        multicore = _detect_multicore()

    f_g, hid = g_params["w1"].shape
    f_kg, hid_kg = kg_params["w1"].shape
    assert hid == hid_kg, "both encoders must share the hidden width"
    assert g_params["w2"].shape == (hid, hid)
    assert kg_params["w2"].shape == (hid, hid)
    hid_p, proj = proj_params["w"].shape
    assert hid_p == hid

    h_pad = _round_up(hid, LANE)     # lane-dense H output columns
    p_pad = _round_up(proj, LANE)    # lane-dense Z output columns

    prep = {
        "multicore": bool(multicore),
        "dtype": param_dtype,
        "hid": hid, "proj": proj, "h_pad": h_pad, "p_pad": p_pad,
        # Contraction dims stay natural width; only OUTPUT columns are padded.
        "g_w1": g_params["w1"].astype(param_dtype),
        "kg_w1": kg_params["w1"].astype(param_dtype),
        "g_w2": _maybe_pad2(g_params["w2"], hid, h_pad).astype(param_dtype),
        "kg_w2": _maybe_pad2(kg_params["w2"], hid, h_pad).astype(param_dtype),
        # Fused-path projection: rows padded to h_pad because H in VMEM is
        # lane-padded (zero rows contribute exactly 0).  Standalone head keeps
        # K = hid.
        "wp": _maybe_pad2(proj_params["w"], h_pad, p_pad).astype(param_dtype),
        "wp_head": _maybe_pad2(proj_params["w"], hid, p_pad).astype(param_dtype),
        "bp": jnp.pad(proj_params["b"], (0, p_pad - proj))
                 .reshape(1, p_pad).astype(jnp.float32),
    }
    if multicore:
        f_c = max(f_g, f_kg)
        prep["f_common"] = f_c
        prep["w1_stack"] = jnp.stack(
            [_maybe_pad2(g_params["w1"], f_c, hid),
             _maybe_pad2(kg_params["w1"], f_c, hid)]).astype(param_dtype)
        prep["w2_stack"] = jnp.stack([prep["g_w2"], prep["kg_w2"]])
    return prep


# ----------------------------------------------------------------------------
# Forward wrappers
# ----------------------------------------------------------------------------
def _forward_singlecore(prep, g_data, kg_data):
    """grid=() — both encoders + fused projection in one launch (v5e/v6e)."""
    g_x, g_a = g_data
    kg_x, kg_a = kg_data
    dt = prep["dtype"]
    n_g, f_g = g_x.shape
    n_kg, f_kg = kg_x.shape
    n_gp = _round_up(n_g, SUBLANE)
    n_kp = _round_up(n_kg, SUBLANE)
    hid, h_pad, p_pad, proj = prep["hid"], prep["h_pad"], prep["p_pad"], prep["proj"]

    inputs = (
        _maybe_pad2(g_a, n_gp, n_gp).astype(dt),
        _maybe_pad2(g_x, n_gp, f_g).astype(dt),
        prep["g_w1"], prep["g_w2"],
        _maybe_pad2(kg_a, n_kp, n_kp).astype(dt),
        _maybe_pad2(kg_x, n_kp, f_kg).astype(dt),
        prep["kg_w1"], prep["kg_w2"],
        prep["wp"], prep["bp"],
    )
    out_shape = (
        jax.ShapeDtypeStruct((n_gp, h_pad), jnp.float32),
        jax.ShapeDtypeStruct((n_kp, h_pad), jnp.float32),
        jax.ShapeDtypeStruct((n_gp, p_pad), jnp.float32),
        jax.ShapeDtypeStruct((n_kp, p_pad), jnp.float32),
    )

    def _enc_flops(n, f):
        return (2 * n * f * hid + 2 * n * n * hid
                + 2 * n * hid * h_pad + 2 * n * n * h_pad
                + 2 * n * h_pad * p_pad)

    flops = _enc_flops(n_gp, f_g) + _enc_flops(n_kp, f_kg)
    bytes_accessed = sum(int(v.size) * v.dtype.itemsize for v in inputs)
    bytes_accessed += (n_gp + n_kp) * (h_pad + p_pad) * 4

    g_h, kg_h, z_g, z_kg = pl.pallas_call(
        _dual_graph_kernel,
        out_shape=out_shape,
        cost_estimate=pl.CostEstimate(flops=int(flops), transcendentals=0,
                                      bytes_accessed=int(bytes_accessed)),
    )(*inputs)
    return (g_h[:n_g, :hid], kg_h[:n_kg, :hid],
            z_g[:n_g, :proj], z_kg[:n_kg, :proj])


def _forward_multicore(prep, g_data, kg_data):
    """grid=(2,) + "parallel" — one graph per grid step (TC sharding on v7x)."""
    g_x, g_a = g_data
    kg_x, kg_a = kg_data
    dt = prep["dtype"]
    n_g, f_g = g_x.shape
    n_kg, f_kg = kg_x.shape
    f_c = prep["f_common"]
    n_pad = _round_up(max(n_g, n_kg), SUBLANE)
    hid, h_pad, p_pad, proj = prep["hid"], prep["h_pad"], prep["p_pad"], prep["proj"]

    a_stack = jnp.stack([_maybe_pad2(g_a, n_pad, n_pad),
                         _maybe_pad2(kg_a, n_pad, n_pad)]).astype(dt)
    x_stack = jnp.stack([_maybe_pad2(g_x, n_pad, f_c),
                         _maybe_pad2(kg_x, n_pad, f_c)]).astype(dt)
    inputs = (a_stack, x_stack, prep["w1_stack"], prep["w2_stack"],
              prep["wp"], prep["bp"])

    in_specs = [
        pl.BlockSpec((1, n_pad, n_pad), lambda i: (i, 0, 0)),
        pl.BlockSpec((1, n_pad, f_c), lambda i: (i, 0, 0)),
        pl.BlockSpec((1, f_c, hid), lambda i: (i, 0, 0)),
        pl.BlockSpec((1, hid, h_pad), lambda i: (i, 0, 0)),
        pl.BlockSpec((h_pad, p_pad), lambda i: (0, 0)),
        pl.BlockSpec((1, p_pad), lambda i: (0, 0)),
    ]
    out_shape = (jax.ShapeDtypeStruct((2, n_pad, h_pad), jnp.float32),
                 jax.ShapeDtypeStruct((2, n_pad, p_pad), jnp.float32))
    out_specs = (pl.BlockSpec((1, n_pad, h_pad), lambda i: (i, 0, 0)),
                 pl.BlockSpec((1, n_pad, p_pad), lambda i: (i, 0, 0)))

    flops = 2 * (2 * n_pad * f_c * hid + 2 * n_pad * n_pad * hid
                 + 2 * n_pad * hid * h_pad + 2 * n_pad * n_pad * h_pad
                 + 2 * n_pad * h_pad * p_pad)
    # Stacked tensors stream once; wp/bp are DMA'd once per grid step (x2).
    bytes_accessed = sum(int(v.size) * v.dtype.itemsize for v in
                         (a_stack, x_stack, prep["w1_stack"], prep["w2_stack"]))
    bytes_accessed += 2 * sum(int(v.size) * v.dtype.itemsize
                              for v in (prep["wp"], prep["bp"]))
    bytes_accessed += 2 * n_pad * (h_pad + p_pad) * 4

    h_stack, z_stack = pl.pallas_call(
        _stacked_graph_kernel,
        out_shape=out_shape,
        grid=(2,),
        in_specs=in_specs,
        out_specs=out_specs,
        compiler_params=pltpu.CompilerParams(
            dimension_semantics=("parallel",)),
        cost_estimate=pl.CostEstimate(flops=int(flops), transcendentals=0,
                                      bytes_accessed=int(bytes_accessed)),
    )(*inputs)
    return (h_stack[0, :n_g, :hid], h_stack[1, :n_kg, :hid],
            z_stack[0, :n_g, :proj], z_stack[1, :n_kg, :proj])


def gnn_disease_forward_and_project(prep, g_data, kg_data):
    """Fully fused forward + projection head: (g_h, kg_h, z_g, z_kg)."""
    fwd = _forward_multicore if prep["multicore"] else _forward_singlecore
    return fwd(prep, g_data, kg_data)


def gnn_disease_forward(prep, g_data, kg_data):
    """Mirror of GNNDisease.forward: returns (g_h, kg_h) from one pallas_call."""
    g_h, kg_h, _, _ = gnn_disease_forward_and_project(prep, g_data, kg_data)
    return g_h, kg_h


def nonlinear_transformation(prep, h):
    """Mirror of GNNDisease.nonlinear_transformation (standalone head).

    Weights are pre-padded at prepare time; prefer the fused
    gnn_disease_forward_and_project path in hot loops.
    """
    n, hid = h.shape
    assert hid == prep["hid"]
    n_pad = _round_up(n, SUBLANE)
    h_p = _maybe_pad2(h, n_pad, hid).astype(prep["dtype"])
    z = pl.pallas_call(
        _linear_kernel,
        out_shape=jax.ShapeDtypeStruct((n_pad, prep["p_pad"]), jnp.float32),
    )(h_p, prep["wp_head"], prep["bp"])
    return z[:n, :prep["proj"]]


# ----------------------------------------------------------------------------
# Helpers: deterministic init + normalized adjacency + bf16-matched reference
# ----------------------------------------------------------------------------
def make_normalized_adj(key, n, p=0.2):
    """Symmetric random graph, A_hat = D^-1/2 (A + I) D^-1/2."""
    m = (jax.random.uniform(key, (n, n)) < p).astype(jnp.float32)
    a = jnp.clip(m + m.T, 0.0, 1.0) + jnp.eye(n, dtype=jnp.float32)
    d_inv_sqrt = 1.0 / jnp.sqrt(jnp.sum(a, axis=1))
    return a * d_inv_sqrt[:, None] * d_inv_sqrt[None, :]


def glorot(key, shape):
    limit = jnp.sqrt(6.0 / (shape[0] + shape[1]))
    return jax.random.uniform(key, shape, jnp.float32, -limit, limit)


def _q(x):
    """Round-trip through bf16 (matches the kernel's operand precision)."""
    return x.astype(jnp.bfloat16).astype(jnp.float32)


def _ref_encode(x, a, w1, w2):
    """Plain-JAX reference mirroring the kernel's bf16-in / f32-accumulate path."""
    xw1 = _q(x) @ _q(w1)
    h1 = jnp.maximum(_q(a) @ _q(xw1), 0.0)
    h1w2 = _q(h1) @ _q(w2)
    return _q(a) @ _q(h1w2)


if __name__ == "__main__":
    # gene graph: 32 nodes / ontology graph: 64 nodes, 16 input features,
    # hidden/embedding dim 32, projection dim 32.
    N_G, N_KG, F_IN, HID, PROJ = 32, 64, 16, 32, 32

    key = jax.random.PRNGKey(0)
    keys = jax.random.split(key, 10)

    g_x = jax.random.normal(keys[0], (N_G, F_IN), jnp.float32)
    g_adj = make_normalized_adj(keys[1], N_G)
    kg_x = jax.random.normal(keys[2], (N_KG, F_IN), jnp.float32)
    kg_adj = make_normalized_adj(keys[3], N_KG)

    g_params = {"w1": glorot(keys[4], (F_IN, HID)), "w2": glorot(keys[5], (HID, HID))}
    kg_params = {"w1": glorot(keys[6], (F_IN, HID)), "w2": glorot(keys[7], (HID, HID))}
    proj_params = {"w": glorot(keys[8], (HID, PROJ)),
                   "b": jax.random.normal(keys[9], (PROJ,), jnp.float32) * 0.01}

    g_data = (g_x, g_adj)
    kg_data = (kg_x, kg_adj)

    # Plain-JAX reference on the same bf16-rounded operands.
    ref_g = _ref_encode(g_x, g_adj, g_params["w1"], g_params["w2"])
    ref_kg = _ref_encode(kg_x, kg_adj, kg_params["w1"], kg_params["w2"])
    ref_zg = _q(ref_g) @ _q(proj_params["w"]) + proj_params["b"]
    ref_zkg = _q(ref_kg) @ _q(proj_params["w"]) + proj_params["b"]

    tol = dict(atol=2e-2, rtol=2e-2)

    # Exercise BOTH code paths (single-TC fused body and grid=(2,) "parallel")
    # so either chip generation is covered; weights are prepared once per prep.
    for multicore in (False, True):
        prep = prepare_gnn_params(g_params, kg_params, proj_params,
                                  multicore=multicore)

        g_h, kg_h = gnn_disease_forward(prep, g_data, kg_data)
        g_h = jax.block_until_ready(g_h)
        kg_h = jax.block_until_ready(kg_h)
        assert g_h.shape == (N_G, HID) and kg_h.shape == (N_KG, HID)
        assert jnp.allclose(g_h, ref_g, **tol)
        assert jnp.allclose(kg_h, ref_kg, **tol)

        fg_h, fkg_h, z_g, z_kg = jax.block_until_ready(
            gnn_disease_forward_and_project(prep, g_data, kg_data))
        assert jnp.allclose(fg_h, ref_g, **tol)
        assert jnp.allclose(fkg_h, ref_kg, **tol)
        assert jnp.allclose(z_g, ref_zg, **tol)
        assert jnp.allclose(z_kg, ref_zkg, **tol)

        z_head = jax.block_until_ready(nonlinear_transformation(prep, g_h))
        ref_zhead = _q(g_h) @ _q(proj_params["w"]) + proj_params["b"]
        assert jnp.allclose(z_head, ref_zhead, **tol)

    # Auto-detected dispatch (intended hot-path usage: prepare once, call many).
    prep = prepare_gnn_params(g_params, kg_params, proj_params)
    jax.block_until_ready(gnn_disease_forward(prep, g_data, kg_data))

    print("KERNEL_OK")
</pallas_src>

<mosaic_0001>
module attributes {stable_mosaic.version = 11 : i64} {
  func.func @_dual_graph_kernel(%arg0: memref<32x32xbf16, #tpu.memory_space<vmem>>, %arg1: memref<32x16xbf16, #tpu.memory_space<vmem>>, %arg2: memref<16x32xbf16, #tpu.memory_space<vmem>>, %arg3: memref<32x128xbf16, #tpu.memory_space<vmem>>, %arg4: memref<64x64xbf16, #tpu.memory_space<vmem>>, %arg5: memref<64x16xbf16, #tpu.memory_space<vmem>>, %arg6: memref<16x32xbf16, #tpu.memory_space<vmem>>, %arg7: memref<32x128xbf16, #tpu.memory_space<vmem>>, %arg8: memref<128x128xbf16, #tpu.memory_space<vmem>>, %arg9: memref<1x128xf32, #tpu.memory_space<vmem>>, %arg10: memref<32x128xf32, #tpu.memory_space<vmem>>, %arg11: memref<64x128xf32, #tpu.memory_space<vmem>>, %arg12: memref<32x128xf32, #tpu.memory_space<vmem>>, %arg13: memref<64x128xf32, #tpu.memory_space<vmem>>) attributes {dimension_semantics = [], scalar_prefetch = 0 : i64, scratch_operands = 0 : i64, tpu.core_type = #tpu.core_type<tc>} {
    %c0 = arith.constant 0 : index
    %c0_0 = arith.constant 0 : index
    %0 = vector.load %arg0[%c0, %c0_0] : memref<32x32xbf16, #tpu.memory_space<vmem>>, vector<32x32xbf16>
    %c0_1 = arith.constant 0 : index
    %c0_2 = arith.constant 0 : index
    %1 = vector.load %arg1[%c0_1, %c0_2] : memref<32x16xbf16, #tpu.memory_space<vmem>>, vector<32x16xbf16>
    %c0_3 = arith.constant 0 : index
    %c0_4 = arith.constant 0 : index
    %2 = vector.load %arg2[%c0_3, %c0_4] : memref<16x32xbf16, #tpu.memory_space<vmem>>, vector<16x32xbf16>
    %c0_5 = arith.constant 0 : index
    %c0_6 = arith.constant 0 : index
    %3 = vector.load %arg3[%c0_5, %c0_6] : memref<32x128xbf16, #tpu.memory_space<vmem>>, vector<32x128xbf16>
    %cst = arith.constant dense<0.000000e+00> : vector<32x32xf32>
    %4 = tpu.matmul %1, %2, %cst {dimension_numbers = #tpu.dot_dimension_numbers<[1], [0], [0], [1], [0, 0, 1, 1], [], []>} : vector<32x16xbf16>, vector<16x32xbf16>, vector<32x32xf32> -> vector<32x32xf32>
    %5 = arith.truncf %4 : vector<32x32xf32> to vector<32x32xbf16>
    %cst_7 = arith.constant dense<0.000000e+00> : vector<32x32xf32>
    %6 = tpu.matmul %0, %5, %cst_7 {dimension_numbers = #tpu.dot_dimension_numbers<[1], [0], [0], [1], [0, 0, 1, 1], [], []>} : vector<32x32xbf16>, vector<32x32xbf16>, vector<32x32xf32> -> vector<32x32xf32>
    %cst_8 = arith.constant 0.000000e+00 : f32
    %7 = vector.broadcast %cst_8 : f32 to vector<32x32xf32>
    %8 = arith.maximumf %6, %7 : vector<32x32xf32>
    %9 = arith.truncf %8 : vector<32x32xf32> to vector<32x32xbf16>
    %cst_9 = arith.constant dense<0.000000e+00> : vector<32x128xf32>
    %10 = tpu.matmul %9, %3, %cst_9 {dimension_numbers = #tpu.dot_dimension_numbers<[1], [0], [0], [1], [0, 0, 1, 1], [], []>} : vector<32x32xbf16>, vector<32x128xbf16>, vector<32x128xf32> -> vector<32x128xf32>
    %11 = arith.truncf %10 : vector<32x128xf32> to vector<32x128xbf16>
    %cst_10 = arith.constant dense<0.000000e+00> : vector<32x128xf32>
    %12 = tpu.matmul %0, %11, %cst_10 {dimension_numbers = #tpu.dot_dimension_numbers<[1], [0], [0], [1], [0, 0, 1, 1], [], []>} : vector<32x32xbf16>, vector<32x128xbf16>, vector<32x128xf32> -> vector<32x128xf32>
    %c0_11 = arith.constant 0 : index
    %c0_12 = arith.constant 0 : index
    %13 = vector.load %arg4[%c0_11, %c0_12] : memref<64x64xbf16, #tpu.memory_space<vmem>>, vector<64x64xbf16>
    %c0_13 = arith.constant 0 : index
    %c0_14 = arith.constant 0 : index
    %14 = vector.load %arg5[%c0_13, %c0_14] : memref<64x16xbf16, #tpu.memory_space<vmem>>, vector<64x16xbf16>
    %c0_15 = arith.constant 0 : index
    %c0_16 = arith.constant 0 : index
    %15 = vector.load %arg6[%c0_15, %c0_16] : memref<16x32xbf16, #tpu.memory_space<vmem>>, vector<16x32xbf16>
    %c0_17 = arith.constant 0 : index
    %c0_18 = arith.constant 0 : index
    %16 = vector.load %arg7[%c0_17, %c0_18] : memref<32x128xbf16, #tpu.memory_space<vmem>>, vector<32x128xbf16>
    %cst_19 = arith.constant dense<0.000000e+00> : vector<64x32xf32>
    %17 = tpu.matmul %14, %15, %cst_19 {dimension_numbers = #tpu.dot_dimension_numbers<[1], [0], [0], [1], [0, 0, 1, 1], [], []>} : vector<64x16xbf16>, vector<16x32xbf16>, vector<64x32xf32> -> vector<64x32xf32>
    %18 = arith.truncf %17 : vector<64x32xf32> to vector<64x32xbf16>
    %cst_20 = arith.constant dense<0.000000e+00> : vector<64x32xf32>
    %19 = tpu.matmul %13, %18, %cst_20 {dimension_numbers = #tpu.dot_dimension_numbers<[1], [0], [0], [1], [0, 0, 1, 1], [], []>} : vector<64x64xbf16>, vector<64x32xbf16>, vector<64x32xf32> -> vector<64x32xf32>
    %cst_21 = arith.constant 0.000000e+00 : f32
    %20 = vector.broadcast %cst_21 : f32 to vector<64x32xf32>
    %21 = arith.maximumf %19, %20 : vector<64x32xf32>
    %22 = arith.truncf %21 : vector<64x32xf32> to vector<64x32xbf16>
    %cst_22 = arith.constant dense<0.000000e+00> : vector<64x128xf32>
    %23 = tpu.matmul %22, %16, %cst_22 {dimension_numbers = #tpu.dot_dimension_numbers<[1], [0], [0], [1], [0, 0, 1, 1], [], []>} : vector<64x32xbf16>, vector<32x128xbf16>, vector<64x128xf32> -> vector<64x128xf32>
    %24 = arith.truncf %23 : vector<64x128xf32> to vector<64x128xbf16>
    %cst_23 = arith.constant dense<0.000000e+00> : vector<64x128xf32>
    %25 = tpu.matmul %13, %24, %cst_23 {dimension_numbers = #tpu.dot_dimension_numbers<[1], [0], [0], [1], [0, 0, 1, 1], [], []>} : vector<64x64xbf16>, vector<64x128xbf16>, vector<64x128xf32> -> vector<64x128xf32>
    %c0_24 = arith.constant 0 : index
    %c0_25 = arith.constant 0 : index
    %26 = vector.load %arg10[%c0_24, %c0_25] : memref<32x128xf32, #tpu.memory_space<vmem>>, vector<32x128xf32>
    tpu.vector_store %arg10[%c0_24, %c0_25], %12 {strides = array<i32>} : memref<32x128xf32, #tpu.memory_space<vmem>>, vector<32x128xf32>,
    %c0_26 = arith.constant 0 : index
    %c0_27 = arith.constant 0 : index
    %27 = vector.load %arg11[%c0_26, %c0_27] : memref<64x128xf32, #tpu.memory_space<vmem>>, vector<64x128xf32>
    tpu.vector_store %arg11[%c0_26, %c0_27], %25 {strides = array<i32>} : memref<64x128xf32, #tpu.memory_space<vmem>>, vector<64x128xf32>,
    %28 = arith.truncf %12 : vector<32x128xf32> to vector<32x128xbf16>
    %c0_28 = arith.constant 0 : index
    %c0_29 = arith.constant 0 : index
    %29 = vector.load %arg8[%c0_28, %c0_29] : memref<128x128xbf16, #tpu.memory_space<vmem>>, vector<128x128xbf16>
    %cst_30 = arith.constant dense<0.000000e+00> : vector<32x128xf32>
    %30 = tpu.matmul %28, %29, %cst_30 {dimension_numbers = #tpu.dot_dimension_numbers<[1], [0], [0], [1], [0, 0, 1, 1], [], []>} : vector<32x128xbf16>, vector<128x128xbf16>, vector<32x128xf32> -> vector<32x128xf32>
    %c0_31 = arith.constant 0 : index
    %c0_32 = arith.constant 0 : index
    %31 = vector.load %arg9[%c0_31, %c0_32] : memref<1x128xf32, #tpu.memory_space<vmem>>, vector<1x128xf32>
    %32 = vector.broadcast %31 : vector<1x128xf32> to vector<32x128xf32>
    %33 = arith.addf %30, %32 : vector<32x128xf32>
    %c0_33 = arith.constant 0 : index
    %c0_34 = arith.constant 0 : index
    %34 = vector.load %arg12[%c0_33, %c0_34] : memref<32x128xf32, #tpu.memory_space<vmem>>, vector<32x128xf32>
    tpu.vector_store %arg12[%c0_33, %c0_34], %33 {strides = array<i32>} : memref<32x128xf32, #tpu.memory_space<vmem>>, vector<32x128xf32>,
    %35 = arith.truncf %25 : vector<64x128xf32> to vector<64x128xbf16>
    %c0_35 = arith.constant 0 : index
    %c0_36 = arith.constant 0 : index
    %36 = vector.load %arg8[%c0_35, %c0_36] : memref<128x128xbf16, #tpu.memory_space<vmem>>, vector<128x128xbf16>
    %cst_37 = arith.constant dense<0.000000e+00> : vector<64x128xf32>
    %37 = tpu.matmul %35, %36, %cst_37 {dimension_numbers = #tpu.dot_dimension_numbers<[1], [0], [0], [1], [0, 0, 1, 1], [], []>} : vector<64x128xbf16>, vector<128x128xbf16>, vector<64x128xf32> -> vector<64x128xf32>
    %c0_38 = arith.constant 0 : index
    %c0_39 = arith.constant 0 : index
    %38 = vector.load %arg9[%c0_38, %c0_39] : memref<1x128xf32, #tpu.memory_space<vmem>>, vector<1x128xf32>
    %39 = vector.broadcast %38 : vector<1x128xf32> to vector<64x128xf32>
    %40 = arith.addf %37, %39 : vector<64x128xf32>
    %c0_40 = arith.constant 0 : index
    %c0_41 = arith.constant 0 : index
    %41 = vector.load %arg13[%c0_40, %c0_41] : memref<64x128xf32, #tpu.memory_space<vmem>>, vector<64x128xf32>
    tpu.vector_store %arg13[%c0_40, %c0_41], %40 {strides = array<i32>} : memref<64x128xf32, #tpu.memory_space<vmem>>, vector<64x128xf32>,
    return
  }
}

</mosaic_0001>

<bundles_post_ra>
// kernel: tpu_custom_call.1
= control target key start
LH: loop header
LB: loop body
LE: loop exit
PB: predicated region body
PF: predicated region fallthrough
CT: control target
= control target key end

     0   :  { %19 = vsyncpa [#allocation3], 0  ;;  %s1888_s0 = inlined_call_operand.hbm [shape: bf16[32,32], index: 0, kind: input, shape index: {}]   ;;  %s1889_s1 = inlined_call_operand.vmem [shape: bf16[32,16], index: 1, kind: input, shape index: {}]   ;;  %s1890_s2 = inlined_call_operand.vmem [shape: bf16[16,32], index: 2, kind: input, shape index: {}]   ;;  %s1891_s3 = inlined_call_operand.hbm [shape: bf16[32,128], index: 3, kind: input, shape index: {}]   ;;  %s1892_s4 = inlined_call_operand.hbm [shape: bf16[64,64], index: 4, kind: input, shape index: {}]   ;;  %s1893_s5 = inlined_call_operand.vmem [shape: bf16[64,16], index: 5, kind: input, shape index: {}]   ;;  %s1894_s6 = inlined_call_operand.hbm [shape: bf16[16,32], index: 6, kind: input, shape index: {}]   ;;  %s1895_s7 = inlined_call_operand.hbm [shape: bf16[32,128], index: 7, kind: input, shape index: {}]   ;;  %s1896_s8 = inlined_call_operand.vmem [shape: bf16[128,128], index: 8, kind: input, shape index: {}]   ;;  %s1897_s9 = inlined_call_operand.vmem [shape: f32[1,128], index: 9, kind: input, shape index: {}]   ;;  %s1898_s10 = inlined_call_operand.hbm [shape: f32[32,128], index: 10, kind: output, shape index: {0}]   ;;  %s1899_s11 = inlined_call_operand.hbm [shape: f32[64,128], index: 11, kind: output, shape index: {1}]   ;;  %s1900_s12 = inlined_call_operand.hbm [shape: f32[32,128], index: 12, kind: output, shape index: {2}]   ;;  %s1901_s13 = inlined_call_operand.hbm [shape: f32[64,128], index: 13, kind: output, shape index: {3}]  }
   0x1   :  { %20 = vsyncpa [#allocation6], 0 }
   0x2   :  { %21 = vsyncpa [#allocation9], 0 }
   0x3   :  { %22 = vsyncpa [#allocation4], 0 }
   0x4   :  { %23 = vsyncpa [#allocation13], 0 }
   0x5   :  { %24 = vsyncpa [#allocation16], 0  ;;  %s1629_s25 = smov [#allocation5]   ;;  %s1630_s27 = smov [#allocation8]  }
   0x6   :  { %s46_s26 = sshll.u32 %s1629_s25, 4  ;;  %s72_s28 = sshll.u32 %s1630_s27, 4  ;;  %s47_s26 = int_to_ptr.vmem [resolvable:$true] %s46_s26  ;;  %s73_s28 = int_to_ptr.vmem [resolvable:$true] %s72_s28 }
   0x7   :  { %s1445_s29 = scalar_lea.vmem %s47_s26, 256  ;;  %p1450_p1 = scmp.lt.s32.totalorder %s47_s26, %s47_s26 }
   0x8   :  { %p1446_p0 = scmp.ne.s32.totalorder %s47_s26, %s1445_s29  ;;  %p1451_p2 = scmp.lt.s32.totalorder %s1445_s29, %s1445_s29 }
   0xa   :  { %p1452_p3 = por %p1451_p2, %p1450_p1 }
   0xc   :  { %p1453_p4 = pnand %p1452_p3, %p1446_p0 }
   0xe   :  { %1456 = shalt.err (!%p1453_p4)
}
   0xf   :  { %s1631_s30 = smov 64   ;;  %s1632_s14 = smov 4  }
  0x10   :  { %52 = dma.hbm_to_vmem [thread:$0]  %s1891_s3, 256, %s47_s26, [#allocation6], %s1631_s30, %s1631_s30, %s1632_s14  }
  0x11   :  { %s1465_s17 = scalar_lea.vmem %s73_s28, 128  ;;  %p1470_p6 = scmp.lt.s32.totalorder %s73_s28, %s73_s28 }
  0x12   :  { %p1466_p5 = scmp.ne.s32.totalorder %s73_s28, %s1465_s17  ;;  %p1471_p7 = scmp.lt.s32.totalorder %s1465_s17, %s1465_s17 }
  0x14   :  { %p1472_p8 = por %p1471_p7, %p1470_p6 }
  0x16   :  { %p1473_p9 = pnand %p1472_p8, %p1466_p5 }
  0x18   :  { %1476 = shalt.err (!%p1473_p9)
}
  0x19   :  { %78 = dma.hbm_to_vmem [thread:$0]  %s1894_s6, 128, %s73_s28, [#allocation9], %s1631_s30, %s1631_s30, %s1632_s14  }
  0x1a   :  { %s1633_s20 = smov [#allocation2]   ;;  %s1634_s22 = smov [#allocation7]  }
  0x1b   :  { %s30_s21 = sshll.u32 %s1633_s20, 4  ;;  %s58_s23 = sshll.u32 %s1634_s22, 4  ;;  %s31_s21 = int_to_ptr.vmem [resolvable:$true] %s30_s21  ;;  %s59_s23 = int_to_ptr.vmem [resolvable:$true] %s58_s23 }
  0x1c   :  { %s1485_s3 = scalar_lea.vmem %s31_s21, 256  ;;  %p1490_p11 = scmp.lt.s32.totalorder %s31_s21, %s31_s21 }
  0x1d   :  { %p1486_p10 = scmp.ne.s32.totalorder %s31_s21, %s1485_s3  ;;  %p1491_p12 = scmp.lt.s32.totalorder %s1485_s3, %s1485_s3 }
  0x1f   :  { %p1492_p13 = por %p1491_p12, %p1490_p11 }
  0x21   :  { %p1493_p0 = pnand %p1492_p13, %p1486_p10 }
  0x23   :  { %1496 = shalt.err (!%p1493_p0)
}
  0x24   :  { %36 = dma.hbm_to_vmem [thread:$0]  %s1888_s0, 256, %s31_s21, [#allocation3], %s1631_s30, %s1631_s30, %s1632_s14  }
  0x25   :  { %s1505_s6 = scalar_lea.vmem %s59_s23, 512  ;;  %p1510_p2 = scmp.lt.s32.totalorder %s59_s23, %s59_s23 }
  0x26   :  { %p1506_p1 = scmp.ne.s32.totalorder %s59_s23, %s1505_s6  ;;  %p1511_p3 = scmp.lt.s32.totalorder %s1505_s6, %s1505_s6 }
  0x28   :  { %p1512_p4 = por %p1511_p3, %p1510_p2 }
  0x2a   :  { %p1513_p5 = pnand %p1512_p4, %p1506_p1 }
  0x2c   :  { %1516 = shalt.err (!%p1513_p5)
}
  0x2d   :  { %64 = dma.hbm_to_vmem [thread:$0]  %s1892_s4, 512, %s59_s23, [#allocation6], %s1631_s30, %s1631_s30, %s1632_s14  }
  0x2e   :  { %s1635_s28 = smov [#allocation10]  }
  0x2f   :  { %s84_s29 = sshll.u32 %s1635_s28, 4  ;;  %s85_s29 = int_to_ptr.vmem [resolvable:$true] %s84_s29 }
  0x30   :  { %s1525_s15 = scalar_lea.vmem %s85_s29, 256  ;;  %p1530_p7 = scmp.lt.s32.totalorder %s85_s29, %s85_s29 }
  0x31   :  { %p1526_p6 = scmp.ne.s32.totalorder %s85_s29, %s1525_s15  ;;  %p1531_p8 = scmp.lt.s32.totalorder %s1525_s15, %s1525_s15 }
  0x33   :  { %p1532_p9 = por %p1531_p8, %p1530_p7 }
  0x35   :  { %p1533_p10 = pnand %p1532_p9, %p1526_p6 }
  0x37   :  { %1536 = shalt.err (!%p1533_p10)
}
  0x38   :  { %90 = dma.hbm_to_vmem [thread:$0]  %s1895_s7, 256, %s85_s29, [#allocation9], %s1631_s30, %s1631_s30, %s1632_s14  }
  0x39   :  { %1617 = dma.done.wait [#allocation3], 256  }
  0x3a   :  { %1618 = vsyncadd [#allocation3], 4294967040 }
  0x3b   :  { %1619 = dma.done.wait [#allocation6], 768  }
  0x3c   :  { %1620 = vsyncadd [#allocation6], 4294966528 }
  0x3d   :  { %1621 = dma.done.wait [#allocation9], 384  }
  0x3e   :  { %1622 = vsyncadd [#allocation9], 4294966912  ;;  %v1403_v0 = vld [vmem:[%s1890_s2] sm:$0xff]   ;;  %vm141_vm0 = vcmask 130048   ;;  %v1405_v2 = vld [vmem:[%s1889_s1 + $0x8] sm:$0xff]   ;;  %vm209_vm1 = vcmask 261120  }
  0x3f   :  { %v1404_v1 = vld [vmem:[%s1889_s1] sm:$0xff]   ;;  %1262 = vmatprep.subr.bf16.mxu0 %v1403_v0  ;;  %v1407_v10 = vld [vmem:[#allocation2 + $0x8] sm:$0xff]   ;;  %v1408_v11 = vld [vmem:[#allocation5 + $0x8] sm:$0xff]   ;;  %vm538_vm2 = vcmask 523264   ;;  %s1637_s0 = smov [#allocation11]  }
  0x40   :  { %1263 = vmatpush3.bf16.msra.mxu0 %v1403_v0  ;;  %1264 = vmatprep.mubr.msk.bf16.mxu0 %vm141_vm0, %v1404_v1  ;;  %v1406_v3 = vld [vmem:[#allocation2] sm:$0xff]   ;;  %v1409_v12 = vld [vmem:[#allocation5] sm:$0xff]   ;;  %v1412_v25 = vld [vmem:[%s1893_s5 + $0x8] sm:$0xff]   ;;  %s1077_s16 = sshll.u32 %s1637_s0, 4  ;;  %s1078_s16 = int_to_ptr.vmem [resolvable:$true] %s1077_s16 }
  0x41   :  { %1288 = vmatprep.mubr.msk.bf16.mxu1 %vm209_vm1, %v1406_v3  ;;  %v1410_v13 = vld [vmem:[#allocation8] sm:$0xff]   ;;  %v1413_v26 = vld [vmem:[%s1893_s5 + $0x10] sm:$0xff]   ;;  %v1414_v27 = vld [vmem:[%s1893_s5 + $0x18] sm:$0xff]  }
  0x42   :  { %v1411_v23 = vld [vmem:[%s1893_s5] sm:$0xff]   ;;  %v1776_v47 = vld [vmem:[#allocation7 + $0x8] sm:$0xff]   ;;  %v1778_v48 = vld [vmem:[#allocation7 + $0x10] sm:$0xff]  }
  0x43   :  { %1265 = vmatmul.mubr.msk.bf16.vlgmr.msra.gmra.mxu0 %vm141_vm0, %v1405_v2  ;;  %v1415_v37 = vld [vmem:[#allocation7] sm:$0xff]   ;;  %v1784_v49 = vld [vmem:[#allocation7 + $0x18] sm:$0xff]   ;;  %v1419_v50 = vld [vmem:[#allocation10 + $0x8] sm:$0xff]  }
  0x44   :  { %1272 = vmatprep.mubr.msk.bf16.mxu0 %vm209_vm1, %v1406_v3  ;;  %v1420_v51 = vld [vmem:[#allocation10] sm:$0xff]   ;;  %v1421_v52 = vld [vmem:[%s1896_s8 + $0x38] sm:$0xff]  }
 0x103   :  { %v1266_v4 = vpop.f32.mrf.mxu0 }
 0x105   :  { %v182_v5 = vpop.f32.mrf.mxu0 }
 0x107   :  { %v1267_v6 = vpop.f32.mrf.mxu0 }
 0x108   :  { %v198_v7 = vpack.c.bf16 %v1267_v6, %v1266_v4 }
 0x109   :  { %v185_v8 = vpop.f32.mrf.mxu0 }
 0x10a   :  { %v197_v9 = vpack.c.bf16 %v185_v8, %v182_v5  ;;  %1268 = vmatprep.subr.bf16.mxu0 %v198_v7  ;;  %v1422_v5 = vld [vmem:[%s1896_s8 + $0x30] sm:$0xff]  }
 0x10b   :  { %1269 = vmatpush3.bf16.msra.mxu0 %v198_v7 }
 0x10c   :  { %1270 = vmatprep.subr.bf16.mxu0 %v197_v9 }
 0x10f   :  { %1271 = vmatpush3.bf16.msra.mxu0 %v197_v9  ;;  %v1423_v9 = vld [vmem:[%s1896_s8 + $0x28] sm:$0xff]  }
 0x110   :  { %1276 = vmatprep.subr.bf16.mxu0 %v1408_v11 }
 0x112   :  { %1273 = vmatmul.mubr.msk.bf16.vlgmr.msra.gmra.mxu0 %vm209_vm1, %v1407_v10 }
 0x113   :  { %1277 = vmatpush3.bf16.msra.mxu0 %v1408_v11 }
 0x114   :  { %1278 = vmatprep.subr.bf16.mxu0 %v1409_v12 }
 0x117   :  { %1279 = vmatpush3.bf16.msra.mxu0 %v1409_v12 }
 0x118   :  { %1292 = vmatprep.subr.bf16.mxu0 %v1410_v13 }
 0x1d2   :  { %v1274_v14 = vpop.f32.mrf.mxu0 }
 0x1d3   :  { %v267_v21 = vmax.f32 %v1274_v14, 0.0 }
 0x1d4   :  { %v250_v15 = vpop.f32.mrf.mxu0 }
 0x1d5   :  { %v265_v19 = vmax.f32 %v250_v15, 0.0  ;;  %v1424_v15 = vld [vmem:[%s1896_s8 + $0x20] sm:$0xff]  }
 0x1d6   :  { %v1275_v16 = vpop.f32.mrf.mxu0 }
 0x1d7   :  { %v268_v17 = vmax.f32 %v1275_v16, 0.0 }
 0x1d8   :  { %v253_v18 = vpop.f32.mrf.mxu0 }
 0x1d9   :  { %v266_v20 = vmax.f32 %v253_v18, 0.0  ;;  %v270_v24 = vpack.c.bf16 %v268_v17, %v267_v21  ;;  %v1425_v17 = vld [vmem:[%s1896_s8 + $0x18] sm:$0xff]   ;;  %v1426_v18 = vld [vmem:[%s1896_s8 + $0x10] sm:$0xff]  }
 0x1db   :  { %v269_v22 = vpack.c.bf16 %v266_v20, %v265_v19  ;;  %v1427_v19 = vld [vmem:[%s1896_s8 + $0x8] sm:$0xff]   ;;  %v1428_v20 = vld [vmem:[%s1896_s8] sm:$0xff]  }
 0x1dd   :  { %1280 = vmatprep.mubr.msk.bf16.mxu0 %vm209_vm1, %v269_v22 }
 0x1de   :  { %1281 = vmatmul.mubr.msk.bf16.vlgmr.msra.gmra.mxu0 %vm209_vm1, %v270_v24 }
 0x1df   :  { %1293 = vmatpush3.bf16.msra.mxu0 %v1410_v13  ;;  %1294 = vmatprep.mubr.msk.bf16.mxu0 %vm141_vm0, %v1411_v23 }
 0x1e0   :  { %1318 = vmatprep.subr.bf16.mxu0 %v1419_v50 }
 0x1e6   :  { %1295 = vmatmul.mubr.msk.bf16.vlgmr.msra.gmra.mxu0 %vm141_vm0, %v1412_v25 }
 0x1e7   :  { %1298 = vmatprep.mubr.msk.bf16.mxu0 %vm141_vm0, %v1413_v26  ;;  %1319 = vmatpush3.bf16.msra.mxu0 %v1419_v50  ;;  %v1436_v50 = vld [vmem:[%s1896_s8] sm:$0xff]  }
 0x1e8   :  { %1320 = vmatprep.subr.bf16.mxu0 %v1420_v51 }
 0x1eb   :  { %1321 = vmatpush3.bf16.msra.mxu0 %v1420_v51 }
 0x1ec   :  { %1346 = vmatprep.subr.bf16.mxu0 %v1421_v52 }
 0x1ee   :  { %1299 = vmatmul.mubr.msk.bf16.gmra.mxu0 %vm141_vm0, %v1414_v27 }
 0x29e   :  { %v1282_v28 = vpop.f32.mrf.mxu0 }
 0x2a0   :  { %v323_v29 = vpop.f32.mrf.mxu0 }
 0x2a2   :  { %v1283_v30 = vpop.f32.mrf.mxu0 }
 0x2a3   :  { %v339_v31 = vpack.c.bf16 %v1283_v30, %v1282_v28 }
 0x2a4   :  { %v326_v32 = vpop.f32.mrf.mxu0 }
 0x2a5   :  { %v338_v33 = vpack.c.bf16 %v326_v32, %v323_v29  ;;  %1284 = vmatprep.subr.bf16.mxu1 %v339_v31 }
 0x2a6   :  { %1285 = vmatpush3.bf16.msra.mxu1 %v339_v31  ;;  %v1296_v34 = vpop.f32.mrf.mxu0 }
 0x2a7   :  { %1286 = vmatprep.subr.bf16.mxu1 %v338_v33 }
 0x2a8   :  { %v483_v35 = vpop.f32.mrf.mxu0 }
 0x2aa   :  { %1287 = vmatpush3.bf16.msra.mxu1 %v338_v33  ;;  %v1297_v36 = vpop.f32.mrf.mxu0 }
 0x2ab   :  { %v515_v45 = vpack.c.bf16 %v1297_v36, %v1296_v34  ;;  %v1429_v34 = vld [vmem:[%s1896_s8 + $0x38] sm:$0xff]   ;;  %v1826_v36 = vld [vmem:[%s1897_s9] ss:$0 sm:$0xff] }
 0x2ac   :  { %v486_v38 = vpop.f32.mrf.mxu0 }
 0x2ad   :  { %1289 = vmatmul.mubr.msk.bf16.vlgmr.msra.gmra.mxu1 %vm209_vm1, %v1407_v10  ;;  %v514_v46 = vpack.c.bf16 %v486_v38, %v483_v35  ;;  %v1430_v35 = vld [vmem:[%s1896_s8 + $0x30] sm:$0xff]  }
 0x2ae   :  { %v1300_v39 = vpop.f32.mrf.mxu0  ;;  %1310 = vmatprep.mubr.msk.bf16.mxu1 %vm538_vm2, %v1415_v37 }
 0x2b0   :  { %v499_v40 = vpop.f32.mrf.mxu0 }
 0x2b2   :  { %v1301_v41 = vpop.f32.mrf.mxu0 }
 0x2b3   :  { %v517_v42 = vpack.c.bf16 %v1301_v41, %v1300_v39  ;;  %v1431_v39 = vld [vmem:[%s1896_s8 + $0x28] sm:$0xff]  }
 0x2b4   :  { %v502_v43 = vpop.f32.mrf.mxu0 }
 0x2b5   :  { %v516_v44 = vpack.c.bf16 %v502_v43, %v499_v40  ;;  %1302 = vmatprep.subr.bf16.mxu1 %v517_v42 }
 0x2b6   :  { %1303 = vmatpush3.bf16.msra.mxu1 %v517_v42 }
 0x2b7   :  { %1304 = vmatprep.subr.bf16.mxu1 %v516_v44 }
 0x2ba   :  { %1305 = vmatpush3.bf16.msra.mxu1 %v516_v44  ;;  %v1432_v44 = vld [vmem:[%s1896_s8 + $0x20] sm:$0xff]  }
 0x2bb   :  { %1306 = vmatprep.subr.bf16.mxu1 %v515_v45 }
 0x2be   :  { %1307 = vmatpush3.bf16.msra.mxu1 %v515_v45 }
 0x2bf   :  { %1308 = vmatprep.subr.bf16.mxu1 %v514_v46 }
 0x2c2   :  { %1309 = vmatpush3.bf16.msra.mxu1 %v514_v46 }
 0x2c5   :  { %1311 = vmatmul.mubr.msk.bf16.vlgmr.msra.gmra.mxu1 %vm538_vm2, %v1776_v47 }
 0x2c6   :  { %1314 = vmatprep.mubr.msk.bf16.mxu1 %vm538_vm2, %v1778_v48 }
 0x2cd   :  { %1315 = vmatmul.mubr.msk.bf16.gmra.mxu1 %vm538_vm2, %v1784_v49 }
 0x2ce   :  { %1338 = vmatprep.mubr.msk.bf16.mxu1 %vm538_vm2, %v1415_v37 }
 0x36d   :  { %v1290_v53 = vpop.f32.mrf.mxu1 }
 0x36e   :  { %788 = vst [vmem:[#allocation11 + $0x10] sm:$0xff] %v1290_v53 }
 0x36f   :  { %v374_v54 = vpop.f32.mrf.mxu1 }
 0x370   :  { %786 = vst [vmem:[#allocation11] sm:$0xff] %v374_v54 }
 0x371   :  { %v1291_v55 = vpop.f32.mrf.mxu1 }
 0x372   :  { %789 = vst [vmem:[#allocation11 + $0x18] sm:$0xff] %v1291_v55  ;;  %v799_v21 = vpack.c.bf16 %v1291_v55, %v1290_v53 }
 0x373   :  { %v377_v56 = vpop.f32.mrf.mxu1 }
 0x374   :  { %787 = vst [vmem:[#allocation11 + $0x8] sm:$0xff] %v377_v56  ;;  %v798_v16 = vpack.c.bf16 %v377_v56, %v374_v54 }
 0x385   :  { %v1312_v57 = vpop.f32.mrf.mxu1 }
 0x386   :  { %v618_v0 = vmax.f32 %v1312_v57, 0.0 }
 0x387   :  { %v585_v58 = vpop.f32.mrf.mxu1 }
 0x388   :  { %v616_v62 = vmax.f32 %v585_v58, 0.0 }
 0x389   :  { %v1313_v59 = vpop.f32.mrf.mxu1 }
 0x38a   :  { %v619_v60 = vmax.f32 %v1313_v59, 0.0 }
 0x38b   :  { %v588_v61 = vpop.f32.mrf.mxu1 }
 0x38c   :  { %v617_v63 = vmax.f32 %v588_v61, 0.0  ;;  %v625_v3 = vpack.c.bf16 %v619_v60, %v618_v0 }
 0x38d   :  { %v1316_v1 = vpop.f32.mrf.mxu1 }
 0x38e   :  { %v624_v2 = vpack.c.bf16 %v617_v63, %v616_v62  ;;  %v622_v12 = vmax.f32 %v1316_v1, 0.0 }
 0x38f   :  { %v601_v4 = vpop.f32.mrf.mxu1 }
 0x390   :  { %1322 = vmatprep.mubr.msk.bf16.mxu0 %vm209_vm1, %v624_v2  ;;  %v620_v10 = vmax.f32 %v601_v4, 0.0 }
 0x391   :  { %v1317_v6 = vpop.f32.mrf.mxu1  ;;  %1323 = vmatmul.mubr.msk.bf16.vlgmr.msra.gmra.mxu0 %vm209_vm1, %v625_v3 }
 0x392   :  { %1347 = vmatpush3.bf16.msra.mxu0 %v1421_v52  ;;  %v623_v7 = vmax.f32 %v1317_v6, 0.0 }
 0x393   :  { %v604_v8 = vpop.f32.mrf.mxu1  ;;  %1348 = vmatprep.subr.bf16.mxu0 %v1422_v5 }
 0x394   :  { %v621_v11 = vmax.f32 %v604_v8, 0.0  ;;  %v627_v14 = vpack.c.bf16 %v623_v7, %v622_v12 }
 0x396   :  { %v626_v13 = vpack.c.bf16 %v621_v11, %v620_v10  ;;  %1349 = vmatpush3.bf16.msra.mxu0 %v1422_v5 }
 0x397   :  { %1350 = vmatprep.subr.bf16.mxu0 %v1423_v9 }
 0x398   :  { %1326 = vmatprep.mubr.msk.bf16.mxu0 %vm209_vm1, %v626_v13 }
 0x399   :  { %1327 = vmatmul.mubr.msk.bf16.gmra.mxu0 %vm209_vm1, %v627_v14 }
 0x39a   :  { %1351 = vmatpush3.bf16.msra.mxu0 %v1423_v9  ;;  %1362 = vmatprep.mubr.bf16.mxu0 %v798_v16 }
 0x39b   :  { %1352 = vmatprep.subr.bf16.mxu0 %v1424_v15 }
 0x39e   :  { %1353 = vmatpush3.bf16.msra.mxu0 %v1424_v15 }
 0x39f   :  { %1354 = vmatprep.subr.bf16.mxu0 %v1425_v17 }
 0x3a2   :  { %1355 = vmatpush3.bf16.msra.mxu0 %v1425_v17 }
 0x3a3   :  { %1356 = vmatprep.subr.bf16.mxu0 %v1426_v18 }
 0x3a6   :  { %1357 = vmatpush3.bf16.msra.mxu0 %v1426_v18 }
 0x3a7   :  { %1358 = vmatprep.subr.bf16.mxu0 %v1427_v19 }
 0x3aa   :  { %1359 = vmatpush3.bf16.msra.mxu0 %v1427_v19 }
 0x3ab   :  { %1360 = vmatprep.subr.bf16.mxu0 %v1428_v20 }
 0x3ae   :  { %1361 = vmatpush3.bf16.msra.mxu0 %v1428_v20 }
 0x3b1   :  { %1363 = vmatmul.mubr.bf16.vlgmr.msra.gmra.mxu0 %v799_v21 }
 0x451   :  { %v1324_v22 = vpop.f32.mrf.mxu0 }
 0x453   :  { %v686_v23 = vpop.f32.mrf.mxu0 }
 0x455   :  { %v1325_v24 = vpop.f32.mrf.mxu0 }
 0x456   :  { %v718_v32 = vpack.c.bf16 %v1325_v24, %v1324_v22 }
 0x457   :  { %v689_v25 = vpop.f32.mrf.mxu0 }
 0x458   :  { %v717_v33 = vpack.c.bf16 %v689_v25, %v686_v23 }
 0x459   :  { %v1328_v26 = vpop.f32.mrf.mxu0 }
 0x45b   :  { %v702_v27 = vpop.f32.mrf.mxu0 }
 0x45d   :  { %v1329_v28 = vpop.f32.mrf.mxu0 }
 0x45e   :  { %v720_v29 = vpack.c.bf16 %v1329_v28, %v1328_v26 }
 0x45f   :  { %v705_v30 = vpop.f32.mrf.mxu0 }
 0x460   :  { %v719_v31 = vpack.c.bf16 %v705_v30, %v702_v27  ;;  %1330 = vmatprep.subr.bf16.mxu1 %v720_v29 }
 0x461   :  { %1331 = vmatpush3.bf16.msra.mxu1 %v720_v29 }
 0x462   :  { %1332 = vmatprep.subr.bf16.mxu1 %v719_v31 }
 0x465   :  { %1333 = vmatpush3.bf16.msra.mxu1 %v719_v31 }
 0x466   :  { %1334 = vmatprep.subr.bf16.mxu1 %v718_v32 }
 0x469   :  { %1335 = vmatpush3.bf16.msra.mxu1 %v718_v32 }
 0x46a   :  { %1336 = vmatprep.subr.bf16.mxu1 %v717_v33 }
 0x46d   :  { %1337 = vmatpush3.bf16.msra.mxu1 %v717_v33 }
 0x46e   :  { %1366 = vmatprep.subr.bf16.mxu1 %v1429_v34 }
 0x470   :  { %1339 = vmatmul.mubr.msk.bf16.vlgmr.msra.gmra.mxu1 %vm538_vm2, %v1776_v47  ;;  %v1433_v47 = vld [vmem:[%s1896_s8 + $0x18] sm:$0xff]  }
 0x471   :  { %v1364_v37 = vpop.f32.mrf.mxu0  ;;  %1342 = vmatprep.mubr.msk.bf16.mxu1 %vm538_vm2, %v1778_v48  ;;  %1367 = vmatpush3.bf16.msra.mxu1 %v1429_v34  ;;  %v1434_v48 = vld [vmem:[%s1896_s8 + $0x10] sm:$0xff]  }
 0x472   :  { %v914_v38 = vadd.f32 %v1364_v37, %v1826_v36  ;;  %1368 = vmatprep.subr.bf16.mxu1 %v1430_v35 }
 0x473   :  { %v905_v40 = vpop.f32.mrf.mxu0 }
 0x474   :  { %922 = vst [vmem:[#allocation14 + $0x10] sm:$0xff] %v914_v38  ;;  %v906_v41 = vadd.f32 %v1826_v36, %v905_v40 }
 0x475   :  { %v1365_v42 = vpop.f32.mrf.mxu0  ;;  %1369 = vmatpush3.bf16.msra.mxu1 %v1430_v35 }
 0x476   :  { %920 = vst [vmem:[#allocation14] sm:$0xff] %v906_v41  ;;  %v917_v43 = vadd.f32 %v1365_v42, %v1826_v36  ;;  %1370 = vmatprep.subr.bf16.mxu1 %v1431_v39 }
 0x477   :  { %v908_v45 = vpop.f32.mrf.mxu0 }
 0x478   :  { %923 = vst [vmem:[#allocation14 + $0x18] sm:$0xff] %v917_v43  ;;  %v909_v46 = vadd.f32 %v1826_v36, %v908_v45  ;;  %1343 = vmatmul.mubr.msk.bf16.gmra.mxu1 %vm538_vm2, %v1784_v49  ;;  %v1435_v49 = vld [vmem:[%s1896_s8 + $0x8] sm:$0xff]   ;;  %s1636_s8 = smov [#allocation12]  }
 0x479   :  { %1371 = vmatpush3.bf16.msra.mxu1 %v1431_v39  ;;  %s1089_s15 = sshll.u32 %s1636_s8, 4  ;;  %s1090_s15 = int_to_ptr.vmem [resolvable:$true] %s1089_s15 }
 0x47a   :  { %921 = vst [vmem:[#allocation14 + $0x8] sm:$0xff] %v909_v46  ;;  %1372 = vmatprep.subr.bf16.mxu1 %v1432_v44  ;;  %s1537_s4 = scalar_lea.vmem %s1090_s15, 1024  ;;  %p1542_p12 = scmp.lt.s32.totalorder %s1090_s15, %s1090_s15 }
 0x47b   :  { %p1538_p11 = scmp.ne.s32.totalorder %s1090_s15, %s1537_s4  ;;  %p1543_p13 = scmp.lt.s32.totalorder %s1537_s4, %s1537_s4 }
 0x47d   :  { %1373 = vmatpush3.bf16.msra.mxu1 %v1432_v44  ;;  %p1544_p0 = por %p1543_p13, %p1542_p12 }
 0x47e   :  { %1374 = vmatprep.subr.bf16.mxu1 %v1433_v47 }
 0x47f   :  { %p1545_p1 = pnand %p1544_p0, %p1538_p11 }
 0x481   :  { %1375 = vmatpush3.bf16.msra.mxu1 %v1433_v47 }
 0x482   :  { %1376 = vmatprep.subr.bf16.mxu1 %v1434_v48 }
 0x485   :  { %1377 = vmatpush3.bf16.msra.mxu1 %v1434_v48 }
 0x486   :  { %1378 = vmatprep.subr.bf16.mxu1 %v1435_v49 }
 0x489   :  { %1379 = vmatpush3.bf16.msra.mxu1 %v1435_v49 }
 0x48a   :  { %1380 = vmatprep.subr.bf16.mxu1 %v1436_v50 }
 0x48d   :  { %1381 = vmatpush3.bf16.msra.mxu1 %v1436_v50 }
 0x530   :  { %v1340_v51 = vpop.f32.mrf.mxu1 }
 0x531   :  { %792 = vst [vmem:[#allocation12 + $0x10] sm:$0xff] %v1340_v51 }
 0x532   :  { %v755_v52 = vpop.f32.mrf.mxu1 }
 0x533   :  { %790 = vst [vmem:[#allocation12] sm:$0xff] %v755_v52 }
 0x534   :  { %v1341_v53 = vpop.f32.mrf.mxu1 }
 0x535   :  { %793 = vst [vmem:[#allocation12 + $0x18] sm:$0xff] %v1341_v53  ;;  %v925_v56 = vpack.c.bf16 %v1341_v53, %v1340_v51 }
 0x536   :  { %v758_v54 = vpop.f32.mrf.mxu1 }
 0x537   :  { %791 = vst [vmem:[#allocation12 + $0x8] sm:$0xff] %v758_v54  ;;  %v924_v55 = vpack.c.bf16 %v758_v54, %v755_v52 }
 0x538   :  { %v1344_v57 = vpop.f32.mrf.mxu1 }
 0x539   :  { %796 = vst [vmem:[#allocation12 + $0x30] sm:$0xff] %v1344_v57  ;;  %1382 = vmatprep.mubr.bf16.mxu1 %v924_v55 }
 0x53a   :  { %v771_v58 = vpop.f32.mrf.mxu1  ;;  %1383 = vmatmul.mubr.bf16.vlgmr.msra.gmra.mxu1 %v925_v56 }
 0x53b   :  { %794 = vst [vmem:[#allocation12 + $0x20] sm:$0xff] %v771_v58 }
 0x53c   :  { %v1345_v59 = vpop.f32.mrf.mxu1 }
 0x53d   :  { %797 = vst [vmem:[#allocation12 + $0x38] sm:$0xff] %v1345_v59  ;;  %v927_v62 = vpack.c.bf16 %v1345_v59, %v1344_v57 }
 0x53e   :  { %v774_v60 = vpop.f32.mrf.mxu1 }
 0x53f   :  { %795 = vst [vmem:[#allocation12 + $0x28] sm:$0xff] %v774_v60  ;;  %v926_v61 = vpack.c.bf16 %v774_v60, %v771_v58 }
 0x541   :  { %1386 = vmatprep.mubr.bf16.mxu1 %v926_v61 }
 0x542   :  { %1387 = vmatmul.mubr.bf16.gmra.mxu1 %v927_v62 }
 0x543   :  { %1548 = shalt.err (!%p1545_p1)
}
 0x544   :  { %s1638_s17 = smov 128   ;;  %s1639_s18 = smov 8  }
 0x545   :  { %1095 = dma.vmem_to_hbm [thread:$0]  %s1090_s15, 1024, %s1899_s11, [#allocation13], %s1638_s17, %s1638_s17, %s1639_s18  }
 0x546   :  { %s1557_s21 = scalar_lea.vmem %s1078_s16, 512  ;;  %p1562_p3 = scmp.lt.s32.totalorder %s1078_s16, %s1078_s16 }
 0x547   :  { %p1558_p2 = scmp.ne.s32.totalorder %s1078_s16, %s1557_s21  ;;  %p1563_p4 = scmp.lt.s32.totalorder %s1557_s21, %s1557_s21 }
 0x549   :  { %p1564_p5 = por %p1563_p4, %p1562_p3 }
 0x54b   :  { %p1565_p6 = pnand %p1564_p5, %p1558_p2 }
 0x54d   :  { %1568 = shalt.err (!%p1565_p6)
}
 0x54e   :  { %1083 = dma.vmem_to_hbm [thread:$0]  %s1078_s16, 512, %s1898_s10, [#allocation4], %s1638_s17, %s1638_s17, %s1639_s18  }
 0x54f   :  { %s1640_s7 = smov [#allocation14]  }
 0x550   :  { %s1101_s30 = sshll.u32 %s1640_s7, 4  ;;  %s1102_s30 = int_to_ptr.vmem [resolvable:$true] %s1101_s30 }
 0x551   :  { %s1577_s14 = scalar_lea.vmem %s1102_s30, 512  ;;  %p1582_p8 = scmp.lt.s32.totalorder %s1102_s30, %s1102_s30 }
 0x552   :  { %p1578_p7 = scmp.ne.s32.totalorder %s1102_s30, %s1577_s14  ;;  %p1583_p9 = scmp.lt.s32.totalorder %s1577_s14, %s1577_s14 }
 0x554   :  { %p1584_p10 = por %p1583_p9, %p1582_p8 }
 0x556   :  { %p1585_p11 = pnand %p1584_p10, %p1578_p7 }
 0x558   :  { %1588 = shalt.err (!%p1585_p11)
}
 0x559   :  { %1107 = dma.vmem_to_hbm [thread:$0]  %s1102_s30, 512, %s1900_s12, [#allocation13], %s1638_s17, %s1638_s17, %s1639_s18  }
 0x55a   :  { %s1641_s10 = smov [#allocation15]  }
 0x55b   :  { %s1113_s12 = sshll.u32 %s1641_s10, 4  ;;  %s1114_s12 = int_to_ptr.vmem [resolvable:$true] %s1113_s12 }
 0x55c   :  { %s1597_s23 = scalar_lea.vmem %s1114_s12, 1024  ;;  %p1602_p13 = scmp.lt.s32.totalorder %s1114_s12, %s1114_s12 }
 0x55d   :  { %p1598_p12 = scmp.ne.s32.totalorder %s1114_s12, %s1597_s23  ;;  %p1603_p0 = scmp.lt.s32.totalorder %s1597_s23, %s1597_s23 }
 0x55f   :  { %p1604_p1 = por %p1603_p0, %p1602_p13 }
 0x561   :  { %p1605_p2 = pnand %p1604_p1, %p1598_p12 }
 0x5fa   :  { %v1384_v63 = vpop.f32.mrf.mxu1 }
 0x5fb   :  { %v1042_v0 = vadd.f32 %v1384_v63, %v1826_v36 }
 0x5fc   :  { %v1033_v1 = vpop.f32.mrf.mxu1 }
 0x5fd   :  { %1066 = vst [vmem:[#allocation15 + $0x10] sm:$0xff] %v1042_v0  ;;  %v1034_v2 = vadd.f32 %v1826_v36, %v1033_v1 }
 0x5fe   :  { %v1385_v3 = vpop.f32.mrf.mxu1 }
 0x5ff   :  { %1064 = vst [vmem:[#allocation15] sm:$0xff] %v1034_v2  ;;  %v1045_v4 = vadd.f32 %v1385_v3, %v1826_v36 }
 0x600   :  { %v1036_v5 = vpop.f32.mrf.mxu1 }
 0x601   :  { %1067 = vst [vmem:[#allocation15 + $0x18] sm:$0xff] %v1045_v4  ;;  %v1037_v6 = vadd.f32 %v1826_v36, %v1036_v5 }
 0x602   :  { %v1388_v7 = vpop.f32.mrf.mxu1 }
 0x603   :  { %1065 = vst [vmem:[#allocation15 + $0x8] sm:$0xff] %v1037_v6  ;;  %v1058_v8 = vadd.f32 %v1388_v7, %v1826_v36 }
 0x604   :  { %v1049_v9 = vpop.f32.mrf.mxu1 }
 0x605   :  { %1070 = vst [vmem:[#allocation15 + $0x30] sm:$0xff] %v1058_v8  ;;  %v1050_v10 = vadd.f32 %v1826_v36, %v1049_v9 }
 0x606   :  { %v1389_v11 = vpop.f32.mrf.mxu1 }
 0x607   :  { %1068 = vst [vmem:[#allocation15 + $0x20] sm:$0xff] %v1050_v10  ;;  %v1061_v12 = vadd.f32 %v1389_v11, %v1826_v36 }
 0x608   :  { %v1052_v13 = vpop.f32.mrf.mxu1 }
 0x609   :  { %1071 = vst [vmem:[#allocation15 + $0x38] sm:$0xff] %v1061_v12  ;;  %v1053_v14 = vadd.f32 %v1826_v36, %v1052_v13 }
 0x60b   :  { %1069 = vst [vmem:[#allocation15 + $0x28] sm:$0xff] %v1053_v14 }
 0x60c   :  { %1608 = shalt.err (!%p1605_p2)
}
 0x60d   :  { %1119 = dma.vmem_to_hbm [thread:$0]  %s1114_s12, 1024, %s1901_s13, [#allocation16], %s1638_s17, %s1638_s17, %s1639_s18  }
 0x60e   :  { %1623 = dma.done.wait [#allocation4], 512  }
 0x60f   :  { %1624 = vsyncadd [#allocation4], 4294966784 }
 0x610   :  { %1625 = dma.done.wait [#allocation13], 1536  }
 0x611   :  { %1626 = vsyncadd [#allocation13], 4294965760 }
 0x612   :  { %1627 = dma.done.wait [#allocation16], 1024  }
 0x613   :  { %1628 = vsyncadd [#allocation16], 4294966272 }
 0x614   :  { %1132 = vsyncpa [#allocation3], 1 }
 0x615   :  { %1133 = vsyncpa [#allocation6], 1 }
 0x616   :  { %1134 = vsyncpa [#allocation9], 1 }
 0x617   :  { %1135 = vsyncpa [#allocation4], 1 }
 0x618   :  { %1136 = vsyncpa [#allocation13], 1 }
 0x619   :  { %1137 = vsyncpa [#allocation16], 1 }

</bundles_post_ra>
